<compile_context>
chip_gen: v7x
topology: tpu7x:2x2x1
jax: 0.10.0
libtpu: 0.0.40
codegen_flags: <defaults>
</compile_context>

<pallas_src>
import jax
import jax.numpy as jnp
from jax.experimental import pallas as pl
from jax.experimental.pallas import tpu as pltpu

BN_EPS = 1e-5
_LANES = 128


# ---------------------------------------------------------------------------
# In-kernel helpers (static Python loops unroll at trace time).
# ---------------------------------------------------------------------------
def _lane_chunk_partial_f32(x_ref, n_chunks):
    """Sum `n_chunks` 128-lane chunks of x_ref (tb, tc, thw) into a
    (tb, tc, 128) f32 value.  Each chunk is a lane-aligned static slice of the
    pipeline buffer, so this is DMA + elementwise VPU adds only (no XLU)."""
    s = x_ref[:, :, 0:_LANES].astype(jnp.float32)
    for k in range(1, n_chunks):
        lo = k * _LANES
        s = s + x_ref[:, :, lo:lo + _LANES].astype(jnp.float32)
    return s


def _lane_sum_f32(x_ref):
    """Full spatial sum of x_ref (tb, tc, thw) -> (tb, tc) f32, any thw.
    128-lane chunks are combined with VPU adds; the single cross-lane XLU
    reduce runs once on a (tb, tc, 128) value (plus a small tail reduce when
    thw is not a multiple of 128)."""
    thw = x_ref.shape[-1]
    n = thw // _LANES
    total = None
    if n >= 1:
        total = jnp.sum(_lane_chunk_partial_f32(x_ref, n), axis=-1)
    rem = thw - n * _LANES
    if rem:
        tail = jnp.sum(x_ref[:, :, n * _LANES:].astype(jnp.float32), axis=-1)
        total = tail if total is None else total + tail
    return total


# ---------------------------------------------------------------------------
# Kernels
# ---------------------------------------------------------------------------
def _head_kernel_single(x1_ref, x2_ref, ss_ref, out1_ref, out2_ref):
    """grid = (b_tiles, c_tiles); each block covers the full HW extent, so the
    spatial reduce happens exactly once per output tile (it IS the epilogue)."""
    scale = ss_ref[0:1, :]      # (1, tc): gamma * rsqrt(var+eps) / HW
    shift = ss_ref[1:2, :]      # (1, tc): beta - mean * gamma * rsqrt(var+eps)
    out1_ref[...] = (_lane_sum_f32(x1_ref) * scale + shift).astype(out1_ref.dtype)
    out2_ref[...] = (_lane_sum_f32(x2_ref) * scale + shift).astype(out2_ref.dtype)


def _head_kernel_multi(x1_ref, x2_ref, ss_ref, out1_ref, out2_ref,
                       acc1_ref, acc2_ref):
    """grid = (b_tiles, c_tiles, hw_tiles); hw (innermost, 'arbitrary') is the
    reduction.  Hot loop: DMA + VPU chunk adds into lane-wide (tb, tc, 128)
    f32 accumulators; one XLU lane-reduce + BN FMA in the epilogue."""
    hw = pl.program_id(2)
    n_chunks = x1_ref.shape[-1] // _LANES       # thw is 128-aligned by design

    @pl.when(hw == 0)
    def _():
        acc1_ref[...] = jnp.zeros_like(acc1_ref)
        acc2_ref[...] = jnp.zeros_like(acc2_ref)

    acc1_ref[...] += _lane_chunk_partial_f32(x1_ref, n_chunks)
    acc2_ref[...] += _lane_chunk_partial_f32(x2_ref, n_chunks)

    @pl.when(hw == pl.num_programs(2) - 1)
    def _():
        scale = ss_ref[0:1, :]
        shift = ss_ref[1:2, :]
        out1_ref[...] = (jnp.sum(acc1_ref[...], axis=-1) * scale
                         + shift).astype(out1_ref.dtype)
        out2_ref[...] = (jnp.sum(acc2_ref[...], axis=-1) * scale
                         + shift).astype(out2_ref.dtype)


# ---------------------------------------------------------------------------
# Wrapper: block selection + pallas_call
# ---------------------------------------------------------------------------
def _aligned_divisors_desc(n, align):
    """Divisors of n that are multiples of `align` (plus n itself), descending."""
    out = {n}
    d = align
    while d < n:
        if n % d == 0:
            out.add(d)
        d += align
    return sorted(out, reverse=True)


def _tpu_vmem_budget():
    """(per-input block byte budget, vmem_limit ceiling) by TPU generation."""
    try:
        cap = int(pltpu.get_tpu_info().vmem_capacity_bytes)
    except Exception:
        cap = 64 << 20                      # unknown -> assume smallest (v7x)
    if cap >= (100 << 20):                  # v5e / v6e: 128 MiB physical VMEM
        return 16 << 20, 100 << 20
    return 8 << 20, 48 << 20                # v7x (64 MiB per TC) or unknown


def siamese_forward(base_feat1_nchw, base_feat2_nchw,
                    bn_gamma, bn_beta, bn_mean, bn_var,
                    *, block_budget_bytes=None):
    """Eval-mode SiameseNetwork head (neck='bnneck', neck_feat='after').

    base_feat*_nchw: (B, C, H, W) — output of self.base(input*), f32 or bf16.
    bn_*: (C,) — BatchNorm1d(self.in_planes) params / running stats.
    Returns (B, 2*C), same dtype as the feature maps.
    """
    B, C, H, W = base_feat1_nchw.shape
    assert base_feat2_nchw.shape == (B, C, H, W)
    HW = H * W
    dtype = base_feat1_nchw.dtype
    itemsize = jnp.dtype(dtype).itemsize

    # Free, contiguous reshape of the backbone's NCHW output (no HBM relayout).
    x1 = base_feat1_nchw.reshape(B, C, HW)
    x2 = base_feat2_nchw.reshape(B, C, HW)

    # Fold inference BatchNorm1d (+ the 1/HW of the GAP) into one (2, C) f32
    # scale/shift table — a single tiny DMA per channel tile.
    inv_std = jax.lax.rsqrt(bn_var.astype(jnp.float32) + BN_EPS)
    scale = bn_gamma.astype(jnp.float32) * inv_std
    shift = bn_beta.astype(jnp.float32) - bn_mean.astype(jnp.float32) * scale
    ss = jnp.stack([scale * (1.0 / HW), shift], axis=0)          # (2, C) f32

    # ---- batch tile: 8-sublane aligned ({full B<=8, 8}; pad otherwise) ------
    if B <= 8:
        tb, B_pad = B, B
    elif B % 8 == 0:
        tb, B_pad = 8, B
    else:
        # TODO(synk): padding costs one HBM copy of the feature maps; a masked
        # tail block would avoid it but complicates the epilogue.
        B_pad = ((B + 7) // 8) * 8
        tb = 8
        pad = ((0, B_pad - B), (0, 0), (0, 0))
        x1 = jnp.pad(x1, pad)
        x2 = jnp.pad(x2, pad)

    # ---- channel / spatial tiles: dtype-aware byte budget, prefer full HW ---
    budget, vmem_ceiling = _tpu_vmem_budget()
    if block_budget_bytes is not None:
        budget = block_budget_bytes

    tc_cands = _aligned_divisors_desc(C, 128)
    thw = HW
    tc = None
    for cand in tc_cands:                       # full-HW block, biggest tc that fits
        if tb * cand * HW * itemsize <= budget:
            tc = cand
            break
    if tc is None:                              # HW itself is huge -> split it
        tc = tc_cands[-1]
        for cand in _aligned_divisors_desc(HW, 128):
            if cand != HW and tb * tc * cand * itemsize <= budget:
                thw = cand
                break
        # If HW has no 128-aligned divisor we keep thw = HW (cannot happen for
        # realistic GAP feature maps); the vmem limit below scales with it.

    multi_hw = thw != HW

    # v7x has 2 TensorCores: keep the parallel grid extent splittable.
    if not multi_hw and (B_pad // tb) * (C // tc) == 1:
        for cand in tc_cands:
            if (cand < tc and (C // cand) % 2 == 0
                    and tb * cand * thw * itemsize >= (2 << 20)):
                tc = cand
                break

    in_block = tb * tc * thw * itemsize
    out_block = tb * tc * itemsize
    acc_bytes = (2 * tb * tc * _LANES * 4) if multi_hw else 0
    needed = 4 * in_block + 4 * out_block + acc_bytes + 4 * C * 4 + (4 << 20)
    vmem_limit = int(min(vmem_ceiling, max(32 << 20, needed)))

    cost = pl.CostEstimate(
        flops=int(2 * B_pad * C * HW + 4 * B_pad * C),
        transcendentals=0,
        bytes_accessed=int(2 * B_pad * C * HW * itemsize
                           + 2 * B_pad * C * itemsize + 2 * C * 4),
    )

    out_shape = (jax.ShapeDtypeStruct((B_pad, C), dtype),
                 jax.ShapeDtypeStruct((B_pad, C), dtype))

    if multi_hw:
        grid = (B_pad // tb, C // tc, HW // thw)
        x_spec = pl.BlockSpec((tb, tc, thw), lambda b, c, hw: (b, c, hw))
        ss_spec = pl.BlockSpec((2, tc), lambda b, c, hw: (0, c))
        o_spec = pl.BlockSpec((tb, tc), lambda b, c, hw: (b, c))
        kernel = _head_kernel_multi
        scratch = [pltpu.VMEM((tb, tc, _LANES), jnp.float32),
                   pltpu.VMEM((tb, tc, _LANES), jnp.float32)]
        semantics = ("parallel", "parallel", "arbitrary")
    else:
        grid = (B_pad // tb, C // tc)
        x_spec = pl.BlockSpec((tb, tc, HW), lambda b, c: (b, c, 0))
        ss_spec = pl.BlockSpec((2, tc), lambda b, c: (0, c))
        o_spec = pl.BlockSpec((tb, tc), lambda b, c: (b, c))
        kernel = _head_kernel_single
        scratch = []
        semantics = ("parallel", "parallel")

    out1, out2 = pl.pallas_call(
        kernel,
        out_shape=out_shape,
        grid=grid,
        in_specs=[x_spec, x_spec, ss_spec],
        out_specs=[o_spec, o_spec],
        scratch_shapes=scratch,
        compiler_params=pltpu.CompilerParams(
            dimension_semantics=semantics,
            vmem_limit_bytes=vmem_limit,
        ),
        cost_estimate=cost,
    )(x1, x2, ss)

    # Tiny (B, 2C) concat (and padding strip) — negligible vs. feature reads.
    return jnp.concatenate([out1[:B], out2[:B]], axis=1)


# ---------------------------------------------------------------------------
# Reference + self-test
# ---------------------------------------------------------------------------
def _reference(base_feat1, base_feat2, g, b, m, v):
    gf1 = jnp.mean(base_feat1, axis=(2, 3))
    gf2 = jnp.mean(base_feat2, axis=(2, 3))
    bn = lambda x: (x - m) * jax.lax.rsqrt(v + BN_EPS) * g + b
    return jnp.concatenate([bn(gf1), bn(gf2)], axis=1)


if __name__ == "__main__":
    key = jax.random.PRNGKey(0)
    ks = jax.random.split(key, 12)

    # Case 1: small stand-in shapes — single full-HW block fast path.
    B, C, H, W = 2, 32, 16, 16
    f1 = jax.random.normal(ks[0], (B, C, H, W), dtype=jnp.float32)
    f2 = jax.random.normal(ks[1], (B, C, H, W), dtype=jnp.float32)
    g = 1.0 + 0.1 * jax.random.normal(ks[2], (C,), dtype=jnp.float32)
    b = 0.1 * jax.random.normal(ks[3], (C,), dtype=jnp.float32)
    m = 0.1 * jax.random.normal(ks[4], (C,), dtype=jnp.float32)
    v = 1.0 + 0.1 * jnp.abs(jax.random.normal(ks[5], (C,), dtype=jnp.float32))

    out = jax.block_until_ready(siamese_forward(f1, f2, g, b, m, v))
    ref = _reference(f1, f2, g, b, m, v)
    assert out.shape == (B, 2 * C)
    assert jnp.allclose(out, ref, atol=1e-4, rtol=1e-5), "case 1 mismatch"

    # Case 2: force the split-HW path (tiny block budget) so the lane-wide
    # accumulator kernel (multi hw steps) is exercised and checked.
    B2, C2, H2, W2 = 2, 256, 16, 16
    f1b = jax.random.normal(ks[6], (B2, C2, H2, W2), dtype=jnp.float32)
    f2b = jax.random.normal(ks[7], (B2, C2, H2, W2), dtype=jnp.float32)
    g2 = 1.0 + 0.1 * jax.random.normal(ks[8], (C2,), dtype=jnp.float32)
    b2 = 0.1 * jax.random.normal(ks[9], (C2,), dtype=jnp.float32)
    m2 = 0.1 * jax.random.normal(ks[10], (C2,), dtype=jnp.float32)
    v2 = 1.0 + 0.1 * jnp.abs(jax.random.normal(ks[11], (C2,), dtype=jnp.float32))

    out2 = jax.block_until_ready(
        siamese_forward(f1b, f2b, g2, b2, m2, v2, block_budget_bytes=140_000))
    ref2 = _reference(f1b, f2b, g2, b2, m2, v2)
    assert out2.shape == (B2, 2 * C2)
    assert jnp.allclose(out2, ref2, atol=1e-4, rtol=1e-5), "case 2 mismatch"

    print("KERNEL_OK")
</pallas_src>

<mosaic_0001>
module attributes {stable_mosaic.version = 11 : i64} {
  func.func @_head_kernel_single(%arg0: i32, %arg1: i32, %arg2: memref<2x32x256xf32, #tpu.memory_space<vmem>>, %arg3: memref<2x32x256xf32, #tpu.memory_space<vmem>>, %arg4: memref<2x32xf32, #tpu.memory_space<vmem>>, %arg5: memref<2x32xf32, #tpu.memory_space<vmem>>, %arg6: memref<2x32xf32, #tpu.memory_space<vmem>>) attributes {dimension_semantics = [#tpu.dimension_semantics<parallel>, #tpu.dimension_semantics<parallel>], iteration_bounds = array<i64: 1, 1>, scalar_prefetch = 0 : i64, scratch_operands = 0 : i64, tpu.core_type = #tpu.core_type<tc>, window_params = [{transform_indices = @transform_0, window_bounds = array<i64: 2, 32, 256>}, {transform_indices = @transform_1, window_bounds = array<i64: 2, 32, 256>}, {transform_indices = @transform_2, window_bounds = array<i64: 2, 32>}, {transform_indices = @transform_3, window_bounds = array<i64: 2, 32>}, {transform_indices = @transform_4, window_bounds = array<i64: 2, 32>}]} {
    %c0 = arith.constant 0 : index
    %c0_0 = arith.constant 0 : index
    %0 = vector.load %arg4[%c0, %c0_0] : memref<2x32xf32, #tpu.memory_space<vmem>>, vector<1x32xf32>
    %c1 = arith.constant 1 : index
    %c0_1 = arith.constant 0 : index
    %1 = vector.load %arg4[%c1, %c0_1] : memref<2x32xf32, #tpu.memory_space<vmem>>, vector<1x32xf32>
    %c0_2 = arith.constant 0 : index
    %c0_3 = arith.constant 0 : index
    %c0_4 = arith.constant 0 : index
    %2 = vector.load %arg2[%c0_2, %c0_3, %c0_4] : memref<2x32x256xf32, #tpu.memory_space<vmem>>, vector<2x32x128xf32>
    %c0_5 = arith.constant 0 : index
    %c0_6 = arith.constant 0 : index
    %c128 = arith.constant 128 : index
    %3 = vector.load %arg2[%c0_5, %c0_6, %c128] : memref<2x32x256xf32, #tpu.memory_space<vmem>>, vector<2x32x128xf32>
    %4 = arith.addf %2, %3 : vector<2x32x128xf32>
    %cst = arith.constant dense<0.000000e+00> : vector<2x32xf32>
    %5 = vector.multi_reduction <add>, %4, %cst [2] : vector<2x32x128xf32> to vector<2x32xf32>
    %6 = vector.broadcast %0 : vector<1x32xf32> to vector<2x32xf32>
    %7 = arith.mulf %5, %6 : vector<2x32xf32>
    %8 = vector.broadcast %1 : vector<1x32xf32> to vector<2x32xf32>
    %9 = arith.addf %7, %8 : vector<2x32xf32>
    %c0_7 = arith.constant 0 : index
    %c0_8 = arith.constant 0 : index
    %10 = vector.load %arg5[%c0_7, %c0_8] : memref<2x32xf32, #tpu.memory_space<vmem>>, vector<2x32xf32>
    tpu.vector_store %arg5[%c0_7, %c0_8], %9 {strides = array<i32>} : memref<2x32xf32, #tpu.memory_space<vmem>>, vector<2x32xf32>,
    %c0_9 = arith.constant 0 : index
    %c0_10 = arith.constant 0 : index
    %c0_11 = arith.constant 0 : index
    %11 = vector.load %arg3[%c0_9, %c0_10, %c0_11] : memref<2x32x256xf32, #tpu.memory_space<vmem>>, vector<2x32x128xf32>
    %c0_12 = arith.constant 0 : index
    %c0_13 = arith.constant 0 : index
    %c128_14 = arith.constant 128 : index
    %12 = vector.load %arg3[%c0_12, %c0_13, %c128_14] : memref<2x32x256xf32, #tpu.memory_space<vmem>>, vector<2x32x128xf32>
    %13 = arith.addf %11, %12 : vector<2x32x128xf32>
    %cst_15 = arith.constant dense<0.000000e+00> : vector<2x32xf32>
    %14 = vector.multi_reduction <add>, %13, %cst_15 [2] : vector<2x32x128xf32> to vector<2x32xf32>
    %15 = vector.broadcast %0 : vector<1x32xf32> to vector<2x32xf32>
    %16 = arith.mulf %14, %15 : vector<2x32xf32>
    %17 = vector.broadcast %1 : vector<1x32xf32> to vector<2x32xf32>
    %18 = arith.addf %16, %17 : vector<2x32xf32>
    %c0_16 = arith.constant 0 : index
    %c0_17 = arith.constant 0 : index
    %19 = vector.load %arg6[%c0_16, %c0_17] : memref<2x32xf32, #tpu.memory_space<vmem>>, vector<2x32xf32>
    tpu.vector_store %arg6[%c0_16, %c0_17], %18 {strides = array<i32>} : memref<2x32xf32, #tpu.memory_space<vmem>>, vector<2x32xf32>,
    return
  }
  func.func @transform_0(%arg0: i32, %arg1: i32) -> (i32, i32, i32) {
    %c0_i32 = arith.constant 0 : i32
    %c0_i32_0 = arith.constant 0 : i32
    return %arg0, %arg1, %c0_i32 : i32, i32, i32
  }
  func.func @transform_1(%arg0: i32, %arg1: i32) -> (i32, i32, i32) {
    %c0_i32 = arith.constant 0 : i32
    %c0_i32_0 = arith.constant 0 : i32
    return %arg0, %arg1, %c0_i32 : i32, i32, i32
  }
  func.func @transform_2(%arg0: i32, %arg1: i32) -> (i32, i32) {
    %c0_i32 = arith.constant 0 : i32
    %c0_i32_0 = arith.constant 0 : i32
    return %c0_i32, %arg1 : i32, i32
  }
  func.func @transform_3(%arg0: i32, %arg1: i32) -> (i32, i32) {
    %c0_i32 = arith.constant 0 : i32
    return %arg0, %arg1 : i32, i32
  }
  func.func @transform_4(%arg0: i32, %arg1: i32) -> (i32, i32) {
    %c0_i32 = arith.constant 0 : i32
    return %arg0, %arg1 : i32, i32
  }
}

</mosaic_0001>

<bundles_post_ra>
// kernel: tpu_custom_call.1
= control target key start
LH: loop header
LB: loop body
LE: loop exit
PB: predicated region body
PF: predicated region fallthrough
CT: control target
= control target key end

     0   :  { %10 = vsyncpa [#allocation3], 0  ;;  %s603_s0 = inlined_call_operand.hbm [shape: f32[2,32,256], index: 0, kind: input, shape index: {}]   ;;  %s604_s1 = inlined_call_operand.hbm [shape: f32[2,32,256], index: 1, kind: input, shape index: {}]   ;;  %s605_s2 = inlined_call_operand.vmem [shape: f32[2,32], index: 2, kind: input, shape index: {}]   ;;  %s606_s3 = inlined_call_operand.hbm [shape: f32[2,32], index: 3, kind: output, shape index: {0}]   ;;  %s607_s4 = inlined_call_operand.hbm [shape: f32[2,32], index: 4, kind: output, shape index: {1}]  }
   0x1   :  { %11 = vsyncpa [#allocation6], 0 }
   0x2   :  { %12 = vsyncpa [#allocation4], 0 }
   0x3   :  { %13 = vsyncpa [#allocation9], 0  ;;  %s501_s15 = smov [#allocation2]   ;;  %s405_s19 = scalar_lea.hbm %s603_s0, 2048 }
   0x4   :  { %s19_s16 = sshll.u32 %s501_s15, 4  ;;  %p406_p0 = scmp.ne.s32.totalorder %s603_s0, %s405_s19  ;;  %s20_s16 = int_to_ptr.vmem [resolvable:$true] %s19_s16 }
   0x5   :  { %p409_p1 = scmp.lt.u32.totalorder %s405_s19, %s603_s0 }
   0x7   :  { %p411_p2 = pnand %p409_p1, %p406_p0 }
   0x9   :  { %414 = shalt.err (!%p411_p2)
}
   0xa   :  { %s415_s24 = scalar_lea.vmem %s20_s16, 2048  ;;  %p420_p4 = scmp.lt.s32.totalorder %s20_s16, %s20_s16 }
   0xb   :  { %p416_p3 = scmp.ne.s32.totalorder %s20_s16, %s415_s24  ;;  %p421_p5 = scmp.lt.s32.totalorder %s415_s24, %s415_s24 }
   0xd   :  { %p422_p6 = por %p421_p5, %p420_p4 }
   0xf   :  { %p423_p7 = pnand %p422_p6, %p416_p3 }
  0x11   :  { %426 = shalt.err (!%p423_p7)
}
  0x12   :  { %s502_s25 = smov 256   ;;  %s503_s26 = smov 16  }
  0x13   :  { %25 = dma.hbm_to_vmem [thread:$0]  %s603_s0, 2048, %s20_s16, [#allocation3], %s502_s25, %s502_s25, %s503_s26  }
  0x14   :  { %s504_s29 = smov [#allocation5]   ;;  %s427_s7 = scalar_lea.hbm %s604_s1, 2048 }
  0x15   :  { %s31_s30 = sshll.u32 %s504_s29, 4  ;;  %p428_p8 = scmp.ne.s32.totalorder %s604_s1, %s427_s7  ;;  %s32_s30 = int_to_ptr.vmem [resolvable:$true] %s31_s30 }
  0x16   :  { %p431_p9 = scmp.lt.u32.totalorder %s427_s7, %s604_s1 }
  0x18   :  { %p433_p10 = pnand %p431_p9, %p428_p8 }
  0x1a   :  { %436 = shalt.err (!%p433_p10)
}
  0x1b   :  { %s437_s12 = scalar_lea.vmem %s32_s30, 2048  ;;  %p442_p12 = scmp.lt.s32.totalorder %s32_s30, %s32_s30 }
  0x1c   :  { %p438_p11 = scmp.ne.s32.totalorder %s32_s30, %s437_s12  ;;  %p443_p13 = scmp.lt.s32.totalorder %s437_s12, %s437_s12 }
  0x1e   :  { %p444_p0 = por %p443_p13, %p442_p12 }
  0x20   :  { %p445_p1 = pnand %p444_p0, %p438_p11 }
  0x22   :  { %448 = shalt.err (!%p445_p1)
}
  0x23   :  { %37 = dma.hbm_to_vmem [thread:$0]  %s604_s1, 2048, %s32_s30, [#allocation6], %s502_s25, %s502_s25, %s503_s26  }
  0x24   :  { %493 = dma.done.wait [#allocation3], 2048  }
  0x25   :  { %494 = vsyncadd [#allocation3], 4294965248 }
  0x26   :  { %495 = dma.done.wait [#allocation6], 2048  }
  0x27   :  { %496 = vsyncadd [#allocation6], 4294965248  ;;  %v50_v0 = vld [vmem:[#allocation2 + $0x20] sm:$0xff]  ;;  %v58_v1 = vld [vmem:[#allocation2 + $0x28] sm:$0xff]  ;;  %v505_v49 = vmov 0   ;;  %vm195_vm0 = vcmask 130112  }
  0x28   :  { %v48_v2 = vld [vmem:[#allocation2] sm:$0xff]  ;;  %v66_v3 = vadd.f32 %v58_v1, %v50_v0  ;;  %v56_v4 = vld [vmem:[#allocation2 + $0x8] sm:$0xff]  ;;  %v49_v8 = vld [vmem:[#allocation2 + $0x10] sm:$0xff]  ;;  %404 = vset.pattern.permute.xlu1 %v505_v49  ;;  %403 = vset.pattern.permute.xlu0 %v505_v49  ;;  %vm202_vm1 = vcmask 195712   ;;  %vm209_vm2 = vcmask 261312   ;;  %vm230_vm3 = vcmask 1041409  }
  0x29   :  { %v52_v5 = vld [vmem:[#allocation2 + $0x40] sm:$0xff]  ;;  %v60_v6 = vld [vmem:[#allocation2 + $0x48] sm:$0xff]  ;;  %v64_v7 = vadd.f32 %v56_v4, %v48_v2  ;;  %v57_v9 = vld [vmem:[#allocation2 + $0x18] sm:$0xff]  ;;  %vm233_vm4 = vcmask 254976   ;;  %s507_s18 = smov [#allocation8]  }
  0x2a   :  { %76 = vadd.xlane.f32.xlu1 %v66_v3  ;;  %v68_v10 = vadd.f32 %v60_v6, %v52_v5  ;;  %v65_v11 = vadd.f32 %v57_v9, %v49_v8  ;;  %v235_v12 = vld [vmem:[#allocation5] sm:$0xff]  ;;  %v243_v13 = vld [vmem:[#allocation5 + $0x8] sm:$0xff]  ;;  %v53_v14 = vld [vmem:[#allocation2 + $0x50] sm:$0xff]  ;;  %s380_s19 = sshll.u32 %s507_s18, 4  ;;  %s381_s19 = int_to_ptr.vmem [resolvable:$true] %s380_s19 }
  0x2b   :  { %72 = vadd.xlane.f32.xlu0 %v64_v7  ;;  %v61_v15 = vld [vmem:[#allocation2 + $0x58] sm:$0xff]  ;;  %v251_v16 = vadd.f32 %v243_v13, %v235_v12  ;;  %v239_v18 = vld [vmem:[#allocation5 + $0x40] sm:$0xff]  ;;  %v247_v19 = vld [vmem:[#allocation5 + $0x48] sm:$0xff] }
  0x2c   :  { %v69_v17 = vadd.f32 %v61_v15, %v53_v14  ;;  %v236_v20 = vld [vmem:[#allocation5 + $0x10] sm:$0xff]  ;;  %v244_v21 = vld [vmem:[#allocation5 + $0x18] sm:$0xff]  ;;  %v255_v22 = vadd.f32 %v247_v19, %v239_v18  ;;  %v54_v24 = vld [vmem:[#allocation2 + $0x60] sm:$0xff] }
  0x2d   :  { %v252_v23 = vadd.f32 %v244_v21, %v236_v20  ;;  %v62_v25 = vld [vmem:[#allocation2 + $0x68] sm:$0xff]  ;;  %v240_v26 = vld [vmem:[#allocation5 + $0x50] sm:$0xff]  ;;  %v248_v27 = vld [vmem:[#allocation5 + $0x58] sm:$0xff] }
  0x2e   :  { %80 = vadd.xlane.f32.xlu1 %v68_v10  ;;  %v70_v28 = vadd.f32 %v62_v25, %v54_v24  ;;  %v256_v29 = vadd.f32 %v248_v27, %v240_v26  ;;  %v241_v30 = vld [vmem:[#allocation5 + $0x60] sm:$0xff]  ;;  %v249_v31 = vld [vmem:[#allocation5 + $0x68] sm:$0xff]  ;;  %v55_v36 = vld [vmem:[#allocation2 + $0x70] sm:$0xff] }
  0x2f   :  { %74 = vadd.xlane.f32.xlu0 %v65_v11  ;;  %v237_v32 = vld [vmem:[#allocation5 + $0x20] sm:$0xff]  ;;  %v245_v33 = vld [vmem:[#allocation5 + $0x28] sm:$0xff]  ;;  %v257_v34 = vadd.f32 %v249_v31, %v241_v30  ;;  %v63_v37 = vld [vmem:[#allocation2 + $0x78] sm:$0xff] }
  0x30   :  { %v253_v35 = vadd.f32 %v245_v33, %v237_v32  ;;  %v51_v38 = vld [vmem:[#allocation2 + $0x30] sm:$0xff]  ;;  %v59_v39 = vld [vmem:[#allocation2 + $0x38] sm:$0xff]  ;;  %v71_v40 = vadd.f32 %v63_v37, %v55_v36  ;;  %v394_v48 = vld [vmem:[%s605_s2] ss:$0 sm:$0xff] }
  0x31   :  { %v67_v41 = vadd.f32 %v59_v39, %v51_v38  ;;  %v242_v42 = vld [vmem:[#allocation5 + $0x70] sm:$0xff]  ;;  %v250_v43 = vld [vmem:[#allocation5 + $0x78] sm:$0xff]  ;;  %v395_v50 = vld [vmem:[%s605_s2 + $0x1] ss:$0 sm:$0xff]  ;;  %s506_s2 = smov [#allocation7]  }
  0x32   :  { %259 = vadd.xlane.f32.xlu1 %v251_v16  ;;  %v238_v44 = vld [vmem:[#allocation5 + $0x30] sm:$0xff]  ;;  %v246_v45 = vld [vmem:[#allocation5 + $0x38] sm:$0xff]  ;;  %v258_v46 = vadd.f32 %v250_v43, %v242_v42  ;;  %s370_s17 = sshll.u32 %s506_s2, 4  ;;  %s371_s17 = int_to_ptr.vmem [resolvable:$true] %s370_s17 }
  0x33   :  { %82 = vadd.xlane.f32.xlu0 %v69_v17  ;;  %v254_v47 = vadd.f32 %v246_v45, %v238_v44  ;;  %s449_s20 = scalar_lea.vmem %s371_s17, 32  ;;  %p454_p3 = scmp.lt.s32.totalorder %s371_s17, %s371_s17 }
  0x34   :  { %p450_p2 = scmp.ne.s32.totalorder %s371_s17, %s449_s20  ;;  %p455_p4 = scmp.lt.s32.totalorder %s449_s20, %s449_s20 }
  0x36   :  { %267 = vadd.xlane.f32.xlu1 %v255_v22  ;;  %p456_p5 = por %p455_p4, %p454_p3 }
  0x37   :  { %261 = vadd.xlane.f32.xlu0 %v252_v23 }
  0x38   :  { %p457_p6 = pnand %p456_p5, %p450_p2 }
  0x3a   :  { %84 = vadd.xlane.f32.xlu1 %v70_v28 }
  0x3b   :  { %269 = vadd.xlane.f32.xlu0 %v256_v29 }
  0x3e   :  { %271 = vadd.xlane.f32.xlu1 %v257_v34 }
  0x3f   :  { %263 = vadd.xlane.f32.xlu0 %v253_v35 }
  0x42   :  { %86 = vadd.xlane.f32.xlu1 %v71_v40 }
  0x43   :  { %78 = vadd.xlane.f32.xlu0 %v67_v41 }
  0x46   :  { %273 = vadd.xlane.f32.xlu1 %v258_v46 }
  0x47   :  { %265 = vadd.xlane.f32.xlu0 %v254_v47  ;;  %v184_v47 = vlaneseq }
  0x57   :  { %98 = vbcast.lane.b32.xlu1 %v394_v48, 264 }
  0x5b   :  { %102 = vbcast.lane.b32.xlu1 %v394_v48, 272 }
  0x5d   :  { %94 = vbcast.lane.b32.xlu0 %v394_v48, 256 }
  0x5f   :  { %106 = vbcast.lane.b32.xlu1 %v394_v48, 280 }
  0x61   :  { %126 = vbcast.lane.b32.xlu0 %v395_v50, 256 }
  0x63   :  { %130 = vbcast.lane.b32.xlu1 %v395_v50, 264 }
  0x65   :  { %134 = vbcast.lane.b32.xlu0 %v395_v50, 272 }
  0x67   :  { %138 = vbcast.lane.b32.xlu1 %v395_v50, 280  ;;  %v185_v50 = vand.u32 127, %v184_v47 }
  0xb7   :  { %v77_v51 = vpop.xlane.xlu1 %76 }
  0xb8   :  { %v73_v52 = vpop.xlane.xlu0 %72 }
  0xbb   :  { %v81_v53 = vpop.xlane.xlu1 %80 }
  0xbc   :  { %v75_v54 = vpop.xlane.xlu0 %74 }
  0xbf   :  { %v260_v55 = vpop.xlane.xlu1 %259 }
  0xc0   :  { %v83_v56 = vpop.xlane.xlu0 %82 }
  0xc3   :  { %v268_v57 = vpop.xlane.xlu1 %267 }
  0xc4   :  { %v262_v58 = vpop.xlane.xlu0 %261 }
  0xc7   :  { %v85_v59 = vpop.xlane.xlu1 %84 }
  0xc8   :  { %v270_v60 = vpop.xlane.xlu0 %269 }
  0xcb   :  { %v272_v61 = vpop.xlane.xlu1 %271 }
  0xcc   :  { %v264_v62 = vpop.xlane.xlu0 %263 }
  0xcf   :  { %v87_v63 = vpop.xlane.xlu1 %86 }
  0xd0   :  { %v79_v0 = vpop.xlane.xlu0 %78 }
  0xd3   :  { %v274_v1 = vpop.xlane.xlu1 %273 }
  0xd4   :  { %v266_v2 = vpop.xlane.xlu0 %265 }
  0xd7   :  { %v99_v3 = vpop.permute.xlu1 %98 }
  0xd8   :  { %v95_v4 = vpop.permute.xlu0 %94  ;;  %v113_v10 = vmul.f32 %v99_v3, %v75_v54  ;;  %v117_v19 = vmul.f32 %v99_v3, %v83_v56  ;;  %v276_v23 = vmul.f32 %v262_v58, %v99_v3  ;;  %v280_v27 = vmul.f32 %v270_v60, %v99_v3 }
  0xd9   :  { %v112_v5 = vmul.f32 %v95_v4, %v73_v52  ;;  %v116_v20 = vmul.f32 %v95_v4, %v81_v53  ;;  %v275_v24 = vmul.f32 %v260_v55, %v95_v4  ;;  %v279_v28 = vmul.f32 %v268_v57, %v95_v4 }
  0xda   :  { %v197_v52 = vadd.s32 4294967280, %v185_v50  ;;  %v187_v55 = vshrl.u32 %v184_v47, 7  ;;  %v204_v57 = vadd.s32 4294967272, %v185_v50 }
  0xdb   :  { %v103_v6 = vpop.permute.xlu1 %102 }
  0xdc   :  { %v127_v7 = vpop.permute.xlu0 %126  ;;  %v114_v14 = vmul.f32 %v103_v6, %v77_v51  ;;  %v118_v31 = vmul.f32 %v103_v6, %v85_v59  ;;  %v277_v32 = vmul.f32 %v264_v62, %v103_v6  ;;  %v281_v35 = vmul.f32 %v272_v61, %v103_v6 }
  0xdd   :  { %v144_v8 = vadd.f32 %v127_v7, %v112_v5  ;;  %v148_v22 = vadd.f32 %v127_v7, %v116_v20  ;;  %v283_v26 = vadd.f32 %v275_v24, %v127_v7  ;;  %v287_v30 = vadd.f32 %v279_v28, %v127_v7 }
  0xde   :  { %v190_v51 = vadd.s32 4294967288, %v185_v50  ;;  %v200_v58 = vsub.s32 %v197_v52, %v187_v55  ;;  %v188_v61 = vsub.s32 %v185_v50, %v187_v55 }
  0xdf   :  { %161 = vperm.xlu0 %403, %v144_v8   ;;  %v107_v9 = vpop.permute.xlu1 %106 }
  0xe0   :  { %v135_v13 = vpop.permute.xlu0 %134  ;;  %v115_v15 = vmul.f32 %v107_v9, %v79_v0  ;;  %v119_v36 = vmul.f32 %v107_v9, %v87_v63  ;;  %v278_v39 = vmul.f32 %v266_v2, %v107_v9  ;;  %v282_v40 = vmul.f32 %v274_v1, %v107_v9 }
  0xe1   :  { %v146_v18 = vadd.f32 %v135_v13, %v114_v14  ;;  %v150_v33 = vadd.f32 %v135_v13, %v118_v31  ;;  %v285_v34 = vadd.f32 %v277_v32, %v135_v13  ;;  %v289_v37 = vadd.f32 %v281_v35, %v135_v13 }
  0xe2   :  { %v193_v56 = vsub.s32 %v190_v51, %v187_v55  ;;  %v207_v63 = vsub.s32 %v204_v57, %v187_v55 }
  0xe3   :  { %v131_v11 = vpop.permute.xlu1 %130 }
  0xe4   :  { %v145_v12 = vadd.f32 %v131_v11, %v113_v10  ;;  %v149_v21 = vadd.f32 %v131_v11, %v117_v19  ;;  %v284_v25 = vadd.f32 %v276_v23, %v131_v11  ;;  %v288_v29 = vadd.f32 %v280_v27, %v131_v11 }
  0xe6   :  { %164 = vperm.xlu1 %404, %v145_v12  }
  0xe7   :  { %v139_v16 = vpop.permute.xlu1 %138 }
  0xe8   :  { %v147_v17 = vadd.f32 %v139_v16, %v115_v15  ;;  %v151_v38 = vadd.f32 %v139_v16, %v119_v36  ;;  %v286_v41 = vadd.f32 %v278_v39, %v139_v16  ;;  %v290_v42 = vadd.f32 %v282_v40, %v139_v16 }
  0xea   :  { %170 = vperm.xlu0 %403, %v147_v17   ;;  %167 = vperm.xlu1 %404, %v146_v18  }
  0xee   :  { %176 = vperm.xlu0 %403, %v149_v21   ;;  %173 = vperm.xlu1 %404, %v148_v22  }
  0xf2   :  { %303 = vperm.xlu0 %403, %v284_v25   ;;  %300 = vperm.xlu1 %404, %v283_v26  }
  0xf6   :  { %315 = vperm.xlu0 %403, %v288_v29   ;;  %312 = vperm.xlu1 %404, %v287_v30  }
  0xfa   :  { %179 = vperm.xlu1 %404, %v150_v33   ;;  %306 = vperm.xlu0 %403, %v285_v34  }
  0xfe   :  { %318 = vperm.xlu1 %404, %v289_v37   ;;  %182 = vperm.xlu0 %403, %v151_v38  }
 0x102   :  { %309 = vperm.xlu1 %404, %v286_v41   ;;  %321 = vperm.xlu0 %403, %v290_v42  }
 0x15e   :  { %v162_v43 = vpop.permute.xlu0 %161 }
 0x15f   :  { %v189_v5 = vrot.slane %v162_v43, %v188_v61 }
 0x165   :  { %v165_v44 = vpop.permute.xlu1 %164 }
 0x166   :  { %v194_v62 = vrot.slane %v165_v44, %v193_v56 }
 0x168   :  { %v196_v7 = vsel %vm195_vm0, %v194_v62, %v189_v5 }
 0x169   :  { %v168_v45 = vpop.permute.xlu1 %167  ;;  %v171_v46 = vpop.permute.xlu0 %170 }
 0x16a   :  { %v201_v0 = vrot.slane %v168_v45, %v200_v58  ;;  %v208_v8 = vrot.slane %v171_v46, %v207_v63 }
 0x16c   :  { %v203_v9 = vsel %vm202_vm1, %v201_v0, %v196_v7 }
 0x16d   :  { %v174_v48 = vpop.permute.xlu1 %173  ;;  %v177_v49 = vpop.permute.xlu0 %176  ;;  %v210_v21 = vsel %vm209_vm2, %v208_v8, %v203_v9 }
 0x16e   :  { %v214_v1 = vrot.slane %v174_v48, %v188_v61  ;;  %v218_v2 = vrot.slane %v177_v49, %v193_v56 }
 0x170   :  { %v219_v10 = vsel %vm195_vm0, %v218_v2, %v214_v1 }
 0x171   :  { %v301_v53 = vpop.permute.xlu1 %300  ;;  %v304_v54 = vpop.permute.xlu0 %303 }
 0x172   :  { %v326_v11 = vrot.slane %v301_v53, %v188_v61  ;;  %v330_v14 = vrot.slane %v304_v54, %v193_v56 }
 0x174   :  { %v331_v26 = vsel %vm195_vm0, %v330_v14, %v326_v11 }
 0x175   :  { %v313_v59 = vpop.permute.xlu1 %312  ;;  %v316_v60 = vpop.permute.xlu0 %315 }
 0x176   :  { %v345_v15 = vrot.slane %v313_v59, %v188_v61  ;;  %v349_v16 = vrot.slane %v316_v60, %v193_v56 }
 0x178   :  { %v350_v27 = vsel %vm195_vm0, %v349_v16, %v345_v15 }
 0x179   :  { %v180_v3 = vpop.permute.xlu1 %179  ;;  %v307_v4 = vpop.permute.xlu0 %306 }
 0x17a   :  { %v223_v6 = vrot.slane %v180_v3, %v200_v58  ;;  %v335_v19 = vrot.slane %v307_v4, %v200_v58 }
 0x17c   :  { %v224_v18 = vsel %vm202_vm1, %v223_v6, %v219_v10  ;;  %v336_v30 = vsel %vm202_vm1, %v335_v19, %v331_v26 }
 0x17d   :  { %v319_v12 = vpop.permute.xlu1 %318  ;;  %v183_v13 = vpop.permute.xlu0 %182 }
 0x17e   :  { %v228_v17 = vrot.slane %v183_v13, %v207_v63  ;;  %v354_v20 = vrot.slane %v319_v12, %v200_v58 }
 0x180   :  { %v229_v22 = vsel %vm209_vm2, %v228_v17, %v224_v18  ;;  %v355_v31 = vsel %vm202_vm1, %v354_v20, %v350_v27 }
 0x181   :  { %v310_v23 = vpop.permute.xlu1 %309  ;;  %v322_v24 = vpop.permute.xlu0 %321  ;;  %v231_v25 = vsel %vm230_vm3, %v229_v22, %v210_v21 }
 0x182   :  { %v340_v28 = vrot.slane %v310_v23, %v207_v63  ;;  %v359_v29 = vrot.slane %v322_v24, %v207_v63  ;;  %234 = vst.msk [vmem:[#allocation7] sm:$0x3] %vm233_vm4, %v231_v25 }
 0x183   :  { %460 = shalt.err (!%p457_p6)
}
 0x184   :  { %s461_s23 = scalar_lea.hbm %s606_s3, 32 }
 0x185   :  { %p462_p7 = scmp.ne.s32.totalorder %s606_s3, %s461_s23  ;;  %p465_p8 = scmp.lt.u32.totalorder %s461_s23, %s606_s3 }
 0x187   :  { %p467_p9 = pnand %p465_p8, %p462_p7 }
 0x189   :  { %470 = shalt.err (!%p467_p9)
}
 0x18a   :  { %373 = dma.vmem_to_hbm [thread:$0]  %s371_s17, 32, %s606_s3, [#allocation4]   ;;  %v341_v32 = vsel %vm209_vm2, %v340_v28, %v336_v30  ;;  %v360_v33 = vsel %vm209_vm2, %v359_v29, %v355_v31 }
 0x18b   :  { %v361_v34 = vsel %vm230_vm3, %v360_v33, %v341_v32  ;;  %s471_s30 = scalar_lea.vmem %s381_s19, 32  ;;  %p476_p11 = scmp.lt.s32.totalorder %s381_s19, %s381_s19 }
 0x18c   :  { %363 = vst.msk [vmem:[#allocation8] sm:$0x3] %vm233_vm4, %v361_v34  ;;  %p472_p10 = scmp.ne.s32.totalorder %s381_s19, %s471_s30  ;;  %p477_p12 = scmp.lt.s32.totalorder %s471_s30, %s471_s30 }
 0x18e   :  { %p478_p13 = por %p477_p12, %p476_p11 }
 0x190   :  { %p479_p0 = pnand %p478_p13, %p472_p10 }
 0x192   :  { %482 = shalt.err (!%p479_p0)
}
 0x193   :  { %s483_s3 = scalar_lea.hbm %s607_s4, 32 }
 0x194   :  { %p484_p1 = scmp.ne.s32.totalorder %s607_s4, %s483_s3  ;;  %p487_p2 = scmp.lt.u32.totalorder %s483_s3, %s607_s4 }
 0x196   :  { %p489_p3 = pnand %p487_p2, %p484_p1 }
 0x198   :  { %492 = shalt.err (!%p489_p3)
}
 0x199   :  { %383 = dma.vmem_to_hbm [thread:$0]  %s381_s19, 32, %s607_s4, [#allocation9]  }
 0x19a   :  { %497 = dma.done.wait [#allocation4], 32  }
 0x19b   :  { %498 = vsyncadd [#allocation4], 4294967264 }
 0x19c   :  { %499 = dma.done.wait [#allocation9], 32  }
 0x19d   :  { %500 = vsyncadd [#allocation9], 4294967264 }
 0x19e   :  { %390 = vsyncpa [#allocation3], 1 }
 0x19f   :  { %391 = vsyncpa [#allocation6], 1 }
 0x1a0   :  { %392 = vsyncpa [#allocation4], 1 }
 0x1a1   :  { %393 = vsyncpa [#allocation9], 1 }

</bundles_post_ra>
